<compile_context>
chip_gen: v6e
topology: v6e:2x2x1
jax: 0.10.0
libtpu: 0.0.40
codegen_flags: <defaults>
</compile_context>

<pallas_src>
import jax
import jax.numpy as jnp
from jax import lax
from jax.experimental import pallas as pl
from jax.experimental.pallas import tpu as pltpu


# ----------------------------------------------------------------------------
# VMEM budgeting helpers (v7x: 64 MiB physical -> ~48 MiB; v5e/v6e -> ~96 MiB)
# ----------------------------------------------------------------------------
def _vmem_limit_bytes():
    try:
        phys = pltpu.get_tpu_info().vmem_capacity_bytes
    except Exception:
        phys = 64 << 20          # conservative fallback (v7x-sized)
    return int(min(phys * 3 // 4, 100 << 20))


def _pick_batch_block(B, S, H, limit_bytes):
    """Largest bb (multiple of 8, <=256) whose 4 double-buffered bf16 residents
    fit in ~60% of the scoped VMEM limit; prefer >=2 blocks (v7x megacore)."""
    if B <= 8:
        return B
    resident = lambda bb: 4 * bb * S * H * 2 * 2      # 4 tensors, bf16, 2 bufs
    for bb in (256, 128, 64, 32, 16, 8):              # prefer 2+ batch blocks
        if 2 * bb <= B and resident(bb) <= 0.6 * limit_bytes:
            return bb
    for bb in (256, 128, 64, 32, 16, 8):
        if bb <= B and resident(bb) <= 0.6 * limit_bytes:
            return bb
    return 8


# ----------------------------------------------------------------------------
# Kernel 1: fused encoders + loop-invariant projections (rows = B*S nodes)
# ----------------------------------------------------------------------------
def precompute_kernel(st_ref, dy_ref,
                      wd_ref, bd_ref,
                      wsas_ref, bsas_ref, wad_ref,
                      wdpd_ref, bdpd_ref,
                      wdec_ref, bdec_ref,
                      dh_ref, ab_ref, pb_ref, dn_ref):
    st = st_ref[...]                                   # (rows, Cs)
    dy = dy_ref[...]                                   # (rows, Cd)
    # dynamic encoder output (needed at decode time for the context matmul)
    dh = jnp.dot(dy, wd_ref[...], preferred_element_type=jnp.float32) + bd_ref[...]
    # attention base: static chain folded on the host into one (Cs,H) matrix
    ab = (jnp.dot(st, wsas_ref[...], preferred_element_type=jnp.float32) + bsas_ref[...]
          + jnp.dot(dh, wad_ref[...], preferred_element_type=jnp.float32))
    # pointer base: dynamic chain folded on the host into one (Cd,H) matrix
    pb = jnp.dot(dy, wdpd_ref[...], preferred_element_type=jnp.float32) + bdpd_ref[...]
    # per-node decoder embedding (decoder 1x1 conv hoisted out of the tour loop)
    dn = jnp.dot(st, wdec_ref[...], preferred_element_type=jnp.float32) + bdec_ref[...]
    dh_ref[...] = dh.astype(dh_ref.dtype)
    ab_ref[...] = ab.astype(ab_ref.dtype)
    pb_ref[...] = pb.astype(pb_ref.dtype)
    dn_ref[...] = dn.astype(dn_ref.dtype)


def precompute(static_cl, dynamic_cl, p, row_block=2048, out_dtype=jnp.bfloat16):
    B, S, Cs = static_cl.shape
    Cd = dynamic_cl.shape[-1]
    H = p['hidden_size']
    BS = B * S
    rb = min(row_block, BS)
    nblk = pl.cdiv(BS, rb)
    BSp = nblk * rb

    st = static_cl.reshape(BS, Cs)
    dy = dynamic_cl.reshape(BS, Cd)
    if BSp != BS:
        st = jnp.pad(st, ((0, BSp - BS), (0, 0)))
        dy = jnp.pad(dy, ((0, BSp - BS), (0, 0)))

    def row_spec(c):
        return pl.BlockSpec((rb, c), lambda i: (i, 0))

    def const_spec(shape):
        nd = len(shape)
        return pl.BlockSpec(shape, lambda i, _nd=nd: (0,) * _nd)

    out_shape = tuple(jax.ShapeDtypeStruct((BSp, H), out_dtype) for _ in range(4))
    dh, ab, pb, dn = pl.pallas_call(
        precompute_kernel,
        out_shape=out_shape,
        grid=(nblk,),
        in_specs=[row_spec(Cs), row_spec(Cd),
                  const_spec((Cd, H)), const_spec((1, H)),
                  const_spec((Cs, H)), const_spec((1, H)), const_spec((H, H)),
                  const_spec((Cd, H)), const_spec((1, H)),
                  const_spec((Cs, H)), const_spec((1, H))],
        out_specs=tuple(row_spec(H) for _ in range(4)),
        compiler_params=pltpu.CompilerParams(
            dimension_semantics=("parallel",),
            vmem_limit_bytes=_vmem_limit_bytes()),
    )(st, dy,
      p['wd_t'], p['bd2'],
      p['wsas_t'], p['bsas2'], p['wad_t'],
      p['wdpd_t'], p['bdpd2'],
      p['wdec_t'], p['bdec2'])

    def unflat(x):
        return x[:BS].reshape(B, S, H)
    return unflat(dh), unflat(ab), unflat(pb), unflat(dn)


# ----------------------------------------------------------------------------
# Kernel 2: the whole pointer-network tour, one grid step == one decode step
# ----------------------------------------------------------------------------
def decode_tour_kernel(dh_ref, ab_ref, pb_ref, dn_ref,
                       wih_ref, bih_ref, whh_ref, bhh_ref,
                       war_ref, va_ref, wpc_ref, vp_ref, bdec_ref,
                       ptr_ref, logp_ref,
                       hh_scr, din_scr):
    t = pl.program_id(1)
    Bb, S, H = dh_ref.shape

    @pl.when(t == 0)
    def _():
        hh_scr[...] = jnp.zeros_like(hh_scr)                      # last_hh = None
        # x0 = zeros -> decoder conv output at step 0 is just its bias
        din_scr[...] = jnp.broadcast_to(bdec_ref[...], din_scr.shape)

    dec_h = din_scr[...]                                          # (Bb, H)
    h_prev = hh_scr[...]                                          # (Bb, H)

    # --- fused GRU cell (PyTorch gate order r, z, n; num_layers=1, dropout=0)
    gi = jnp.dot(dec_h, wih_ref[...], preferred_element_type=jnp.float32) + bih_ref[...]
    gh = jnp.dot(h_prev, whh_ref[...], preferred_element_type=jnp.float32) + bhh_ref[...]
    r = jax.nn.sigmoid(gi[:, :H] + gh[:, :H])
    z = jax.nn.sigmoid(gi[:, H:2 * H] + gh[:, H:2 * H])
    n = jnp.tanh(gi[:, 2 * H:] + r * gh[:, 2 * H:])
    h_new = (1.0 - z) * n + z * h_prev                            # (Bb, H) == rnn_out

    # --- encoder attention: tanh(att_base + rnn_out @ Wa_h^T) . v_a, softmax S
    rnn_term = jnp.dot(h_new, war_ref[...], preferred_element_type=jnp.float32)
    ta = jnp.tanh(ab_ref[...].astype(jnp.float32) + rnn_term[:, None, :])
    att_logits = jnp.sum(ta * va_ref[...][None], axis=-1)         # (Bb, S)
    am = jnp.max(att_logits, axis=-1, keepdims=True)
    ae = jnp.exp(att_logits - am)
    att = ae / jnp.sum(ae, axis=-1, keepdims=True)                # exact softmax
    dh = dh_ref[...].astype(jnp.float32)                          # (Bb, S, H)
    context = jnp.sum(att[:, :, None] * dh, axis=1)               # (Bb, H)

    # --- pointer logits: tanh(ptr_base + context @ Wp_c^T) . v_p
    ctx_term = jnp.dot(context, wpc_ref[...], preferred_element_type=jnp.float32)
    tp = jnp.tanh(pb_ref[...].astype(jnp.float32) + ctx_term[:, None, :])
    logits = jnp.sum(tp * vp_ref[...][None], axis=-1)             # (Bb, S)
    # mask_fn is None -> mask.log() == 0, term dropped entirely
    # TODO(synk): reintroduce the mask-log addend when a mask_fn path is added.

    # --- greedy argmax + log prob of the chosen node (== log softmax max)
    m = jnp.max(logits, axis=-1, keepdims=True)                   # (Bb, 1)
    s = jnp.sum(jnp.exp(logits - m), axis=-1, keepdims=True)      # (Bb, 1)
    logp = -jnp.log(s)                                            # log(max prob)
    iota = lax.broadcasted_iota(jnp.int32, (Bb, S), 1)
    ptr = jnp.min(jnp.where(logits == m, iota, S), axis=-1, keepdims=True)  # (Bb,1)

    # --- O(1) per-step output: this grid step owns its own (1, bb, 1) block
    ptr_ref[...] = ptr[None].astype(jnp.int32)                    # (1, Bb, 1)
    logp_ref[...] = logp[None]

    # --- carry state: new GRU hidden + lane-dense gather of the chosen node's
    #     precomputed decoder embedding (H-space, no per-step conv matmul)
    hh_scr[...] = h_new
    onehot = (iota == ptr).astype(jnp.float32)                    # (Bb, S)
    din_scr[...] = jnp.sum(onehot[:, :, None] * dn_ref[...].astype(jnp.float32), axis=1)


def decode_tour(dyn_h, att_base, ptr_base, dec_nodes, p, tasknum, batch_block=256):
    B, S, H = dyn_h.shape
    limit = _vmem_limit_bytes()
    bb = min(batch_block, _pick_batch_block(B, S, H, limit))
    nbb = pl.cdiv(B, bb)
    Bp = nbb * bb
    if Bp != B:
        pad = ((0, Bp - B), (0, 0), (0, 0))
        dyn_h = jnp.pad(dyn_h, pad)
        att_base = jnp.pad(att_base, pad)
        ptr_base = jnp.pad(ptr_base, pad)
        dec_nodes = jnp.pad(dec_nodes, pad)

    grid = (nbb, tasknum)          # batch blocks parallel (megacore), tour serial

    def bspec(*tail):
        shape = (bb,) + tail
        nd = len(shape)
        return pl.BlockSpec(shape, lambda bi, t, _nd=nd: (bi,) + (0,) * (_nd - 1))

    def wspec(shape):
        nd = len(shape)
        return pl.BlockSpec(shape, lambda bi, t, _nd=nd: (0,) * _nd)

    # per-step output blocks: (tasknum, Bp, 1) arrays, one (1, bb, 1) block / step
    out_shape = (jax.ShapeDtypeStruct((tasknum, Bp, 1), jnp.int32),
                 jax.ShapeDtypeStruct((tasknum, Bp, 1), jnp.float32))
    step_spec = pl.BlockSpec((1, bb, 1), lambda bi, t: (t, bi, 0))

    ptr_tb, logp_tb = pl.pallas_call(
        decode_tour_kernel,
        out_shape=out_shape,
        grid=grid,
        in_specs=[bspec(S, H), bspec(S, H), bspec(S, H), bspec(S, H),
                  wspec((H, 3 * H)), wspec((1, 3 * H)),
                  wspec((H, 3 * H)), wspec((1, 3 * H)),
                  wspec((H, H)), wspec((1, H)),
                  wspec((H, H)), wspec((1, H)),
                  wspec((1, H))],
        out_specs=(step_spec, step_spec),
        scratch_shapes=[pltpu.VMEM((bb, H), jnp.float32),    # GRU hidden
                        pltpu.VMEM((bb, H), jnp.float32)],   # decoder embedding
        compiler_params=pltpu.CompilerParams(
            dimension_semantics=("parallel", "arbitrary"),
            vmem_limit_bytes=limit),
    )(dyn_h, att_base, ptr_base, dec_nodes,
      p['wih_t'], p['bih2'], p['whh_t'], p['bhh2'],
      p['war_t'], p['va2'], p['wpc_t'], p['vp2'], p['bdec2'])

    tour_idx = jnp.transpose(ptr_tb[:, :B, 0], (1, 0))       # (B, tasknum)
    tour_logp = jnp.transpose(logp_tb[:, :B, 0], (1, 0))
    return tour_idx, tour_logp


# ----------------------------------------------------------------------------
# DRL4EC forward (eval / greedy path; update_fn = mask_fn = None, dropout = 0)
# ----------------------------------------------------------------------------
def drl4ec_forward(params, static, dynamic, tasknum):
    """static: (B, static_size, S), dynamic: (B, dynamic_size, S) (PyTorch NCW)."""
    static_cl = jnp.transpose(static, (0, 2, 1)).astype(jnp.float32)    # (B, S, Cs)
    dynamic_cl = jnp.transpose(dynamic, (0, 2, 1)).astype(jnp.float32)  # (B, S, Cd)

    # encoders + loop-invariant attention / pointer / decoder projections
    dyn_h, att_base, ptr_base, dec_nodes = precompute(static_cl, dynamic_cl, params)

    # TODO(synk): training-mode torch.distributions.Categorical sampling path
    # (stochastic resample loop) not implemented; this is the greedy eval path.
    return decode_tour(dyn_h, att_base, ptr_base, dec_nodes, params, tasknum)


# ----------------------------------------------------------------------------
# deterministic parameter initialization (shapes follow the PyTorch module)
# ----------------------------------------------------------------------------
def init_params(key, static_size, dynamic_size, hidden_size):
    H = hidden_size

    def xavier(k, shape, fan_in, fan_out):
        limit = (6.0 / (fan_in + fan_out)) ** 0.5
        return jax.random.uniform(k, shape, jnp.float32, -limit, limit)

    keys = jax.random.split(key, 16)
    p = {'hidden_size': H}

    # encoders: Conv1d(C, H, kernel_size=1) -> weight (H, C), bias (H,)
    w_static = xavier(keys[0], (H, static_size), static_size, H)
    b_static = 0.01 * jax.random.normal(keys[1], (H,), jnp.float32)
    w_dynamic = xavier(keys[2], (H, dynamic_size), dynamic_size, H)
    b_dynamic = 0.01 * jax.random.normal(keys[3], (H,), jnp.float32)
    w_dec = xavier(keys[4], (H, static_size), static_size, H)
    b_dec = 0.01 * jax.random.normal(keys[5], (H,), jnp.float32)

    # GRU(H, H, 1): weight_ih/hh (3H, H), bias_ih/hh (3H,), gate order r, z, n
    w_ih = xavier(keys[6], (3 * H, H), H, 3 * H)
    w_hh = xavier(keys[7], (3 * H, H), H, 3 * H)
    b_ih = 0.01 * jax.random.normal(keys[8], (3 * H,), jnp.float32)
    b_hh = 0.01 * jax.random.normal(keys[9], (3 * H,), jnp.float32)

    # Attention: v (1,1,H), W (1,H,3H);  Pointer: v (1,1,H), W (1,H,2H)
    v_a = xavier(keys[10], (1, H), 1, H)
    w_a = xavier(keys[11], (H, 3 * H), 3 * H, H)
    v_p = xavier(keys[12], (1, H), 1, H)
    w_p = xavier(keys[13], (H, 2 * H), 2 * H, H)

    # ------- kernel-friendly layouts (pre-transposed / gate-fused / folded) ---
    ws_t = w_static.T                            # (Cs, H)
    bs2 = b_static.reshape(1, H)
    wd_t = w_dynamic.T                           # (Cd, H)
    bd2 = b_dynamic.reshape(1, H)
    was_t = w_a[:, :H].T                         # attention W_s   (H, H)
    wad_t = w_a[:, H:2 * H].T                    # attention W_d   (H, H)
    war_t = w_a[:, 2 * H:].T                     # attention W_h   (H, H)
    wpd_t = w_p[:, :H].T                         # pointer   W_d   (H, H)
    wpc_t = w_p[:, H:].T                         # pointer   W_c   (H, H)

    p['wd_t'] = wd_t
    p['bd2'] = bd2
    # host-folded loop-invariant projection chains (saves two H x H matmuls)
    p['wsas_t'] = ws_t @ was_t                   # (Cs, H)
    p['bsas2'] = bs2 @ was_t                     # (1, H)
    p['wad_t'] = wad_t
    p['wdpd_t'] = wd_t @ wpd_t                   # (Cd, H)
    p['bdpd2'] = bd2 @ wpd_t                     # (1, H)
    # decoder 1x1 conv (applied per node in precompute; bias alone == x0 step)
    p['wdec_t'] = w_dec.T                        # (Cs, H)
    p['bdec2'] = b_dec.reshape(1, H)
    # fused GRU gates: x @ W_ih^T -> (B, 3H) ordered r | z | n
    p['wih_t'] = w_ih.T                          # (H, 3H)
    p['bih2'] = b_ih.reshape(1, 3 * H)
    p['whh_t'] = w_hh.T                          # (H, 3H)
    p['bhh2'] = b_hh.reshape(1, 3 * H)
    p['war_t'] = war_t
    p['va2'] = v_a                               # (1, H)
    p['wpc_t'] = wpc_t
    p['vp2'] = v_p                               # (1, H)
    return p


# ----------------------------------------------------------------------------
if __name__ == "__main__":
    key = jax.random.PRNGKey(0)
    k_param, k_static, k_dynamic = jax.random.split(key, 3)

    batch = 2
    static_size = 4
    dynamic_size = 3
    hidden_size = 32
    seq = 8
    tasknum = 5

    params = init_params(k_param, static_size, dynamic_size, hidden_size)

    static = jax.random.normal(k_static, (batch, static_size, seq), jnp.float32)
    dynamic = jax.random.normal(k_dynamic, (batch, dynamic_size, seq), jnp.float32)

    tour_idx, tour_logp = drl4ec_forward(params, static, dynamic, tasknum)
    jax.block_until_ready((tour_idx, tour_logp))

    assert tour_idx.shape == (batch, tasknum)
    assert tour_logp.shape == (batch, tasknum)
    assert bool(jnp.all((tour_idx >= 0) & (tour_idx < seq)))
    assert bool(jnp.all(jnp.isfinite(tour_logp)))
    print("KERNEL_OK")
</pallas_src>

<mosaic_0001>
module attributes {stable_mosaic.version = 11 : i64} {
  func.func @precompute_kernel(%arg0: i32, %arg1: memref<16x4xf32, #tpu.memory_space<vmem>>, %arg2: memref<16x3xf32, #tpu.memory_space<vmem>>, %arg3: memref<3x32xf32, #tpu.memory_space<vmem>>, %arg4: memref<1x32xf32, #tpu.memory_space<vmem>>, %arg5: memref<4x32xf32, #tpu.memory_space<vmem>>, %arg6: memref<1x32xf32, #tpu.memory_space<vmem>>, %arg7: memref<32x32xf32, #tpu.memory_space<vmem>>, %arg8: memref<3x32xf32, #tpu.memory_space<vmem>>, %arg9: memref<1x32xf32, #tpu.memory_space<vmem>>, %arg10: memref<4x32xf32, #tpu.memory_space<vmem>>, %arg11: memref<1x32xf32, #tpu.memory_space<vmem>>, %arg12: memref<16x32xbf16, #tpu.memory_space<vmem>>, %arg13: memref<16x32xbf16, #tpu.memory_space<vmem>>, %arg14: memref<16x32xbf16, #tpu.memory_space<vmem>>, %arg15: memref<16x32xbf16, #tpu.memory_space<vmem>>) attributes {dimension_semantics = [#tpu.dimension_semantics<parallel>], iteration_bounds = array<i64: 1>, scalar_prefetch = 0 : i64, scratch_operands = 0 : i64, tpu.core_type = #tpu.core_type<tc>, window_params = [{transform_indices = @transform_0, window_bounds = array<i64: 16, 4>}, {transform_indices = @transform_1, window_bounds = array<i64: 16, 3>}, {pipeline_mode = #tpu.pipeline_mode<synchronous>, transform_indices = @transform_2, window_bounds = array<i64: 3, 32>}, {pipeline_mode = #tpu.pipeline_mode<synchronous>, transform_indices = @transform_3, window_bounds = array<i64: 1, 32>}, {pipeline_mode = #tpu.pipeline_mode<synchronous>, transform_indices = @transform_4, window_bounds = array<i64: 4, 32>}, {pipeline_mode = #tpu.pipeline_mode<synchronous>, transform_indices = @transform_5, window_bounds = array<i64: 1, 32>}, {pipeline_mode = #tpu.pipeline_mode<synchronous>, transform_indices = @transform_6, window_bounds = array<i64: 32, 32>}, {pipeline_mode = #tpu.pipeline_mode<synchronous>, transform_indices = @transform_7, window_bounds = array<i64: 3, 32>}, {pipeline_mode = #tpu.pipeline_mode<synchronous>, transform_indices = @transform_8, window_bounds = array<i64: 1, 32>}, {pipeline_mode = #tpu.pipeline_mode<synchronous>, transform_indices = @transform_9, window_bounds = array<i64: 4, 32>}, {pipeline_mode = #tpu.pipeline_mode<synchronous>, transform_indices = @transform_10, window_bounds = array<i64: 1, 32>}, {transform_indices = @transform_11, window_bounds = array<i64: 16, 32>}, {transform_indices = @transform_12, window_bounds = array<i64: 16, 32>}, {transform_indices = @transform_13, window_bounds = array<i64: 16, 32>}, {transform_indices = @transform_14, window_bounds = array<i64: 16, 32>}]} {
    %c0 = arith.constant 0 : index
    %c0_0 = arith.constant 0 : index
    %0 = vector.load %arg1[%c0, %c0_0] : memref<16x4xf32, #tpu.memory_space<vmem>>, vector<16x4xf32>
    %c0_1 = arith.constant 0 : index
    %c0_2 = arith.constant 0 : index
    %1 = vector.load %arg2[%c0_1, %c0_2] : memref<16x3xf32, #tpu.memory_space<vmem>>, vector<16x3xf32>
    %c0_3 = arith.constant 0 : index
    %c0_4 = arith.constant 0 : index
    %2 = vector.load %arg3[%c0_3, %c0_4] : memref<3x32xf32, #tpu.memory_space<vmem>>, vector<3x32xf32>
    %cst = arith.constant dense<0.000000e+00> : vector<16x32xf32>
    %3 = tpu.matmul %1, %2, %cst {dimension_numbers = #tpu.dot_dimension_numbers<[1], [0], [0], [1], [0, 0, 1, 1], [], []>} : vector<16x3xf32>, vector<3x32xf32>, vector<16x32xf32> -> vector<16x32xf32>
    %c0_5 = arith.constant 0 : index
    %c0_6 = arith.constant 0 : index
    %4 = vector.load %arg4[%c0_5, %c0_6] : memref<1x32xf32, #tpu.memory_space<vmem>>, vector<1x32xf32>
    %5 = vector.broadcast %4 : vector<1x32xf32> to vector<16x32xf32>
    %6 = arith.addf %3, %5 : vector<16x32xf32>
    %c0_7 = arith.constant 0 : index
    %c0_8 = arith.constant 0 : index
    %7 = vector.load %arg5[%c0_7, %c0_8] : memref<4x32xf32, #tpu.memory_space<vmem>>, vector<4x32xf32>
    %cst_9 = arith.constant dense<0.000000e+00> : vector<16x32xf32>
    %8 = tpu.matmul %0, %7, %cst_9 {dimension_numbers = #tpu.dot_dimension_numbers<[1], [0], [0], [1], [0, 0, 1, 1], [], []>} : vector<16x4xf32>, vector<4x32xf32>, vector<16x32xf32> -> vector<16x32xf32>
    %c0_10 = arith.constant 0 : index
    %c0_11 = arith.constant 0 : index
    %9 = vector.load %arg6[%c0_10, %c0_11] : memref<1x32xf32, #tpu.memory_space<vmem>>, vector<1x32xf32>
    %10 = vector.broadcast %9 : vector<1x32xf32> to vector<16x32xf32>
    %11 = arith.addf %8, %10 : vector<16x32xf32>
    %c0_12 = arith.constant 0 : index
    %c0_13 = arith.constant 0 : index
    %12 = vector.load %arg7[%c0_12, %c0_13] : memref<32x32xf32, #tpu.memory_space<vmem>>, vector<32x32xf32>
    %cst_14 = arith.constant dense<0.000000e+00> : vector<16x32xf32>
    %13 = tpu.matmul %6, %12, %cst_14 {dimension_numbers = #tpu.dot_dimension_numbers<[1], [0], [0], [1], [0, 0, 1, 1], [], []>} : vector<16x32xf32>, vector<32x32xf32>, vector<16x32xf32> -> vector<16x32xf32>
    %14 = arith.addf %11, %13 : vector<16x32xf32>
    %c0_15 = arith.constant 0 : index
    %c0_16 = arith.constant 0 : index
    %15 = vector.load %arg8[%c0_15, %c0_16] : memref<3x32xf32, #tpu.memory_space<vmem>>, vector<3x32xf32>
    %cst_17 = arith.constant dense<0.000000e+00> : vector<16x32xf32>
    %16 = tpu.matmul %1, %15, %cst_17 {dimension_numbers = #tpu.dot_dimension_numbers<[1], [0], [0], [1], [0, 0, 1, 1], [], []>} : vector<16x3xf32>, vector<3x32xf32>, vector<16x32xf32> -> vector<16x32xf32>
    %c0_18 = arith.constant 0 : index
    %c0_19 = arith.constant 0 : index
    %17 = vector.load %arg9[%c0_18, %c0_19] : memref<1x32xf32, #tpu.memory_space<vmem>>, vector<1x32xf32>
    %18 = vector.broadcast %17 : vector<1x32xf32> to vector<16x32xf32>
    %19 = arith.addf %16, %18 : vector<16x32xf32>
    %c0_20 = arith.constant 0 : index
    %c0_21 = arith.constant 0 : index
    %20 = vector.load %arg10[%c0_20, %c0_21] : memref<4x32xf32, #tpu.memory_space<vmem>>, vector<4x32xf32>
    %cst_22 = arith.constant dense<0.000000e+00> : vector<16x32xf32>
    %21 = tpu.matmul %0, %20, %cst_22 {dimension_numbers = #tpu.dot_dimension_numbers<[1], [0], [0], [1], [0, 0, 1, 1], [], []>} : vector<16x4xf32>, vector<4x32xf32>, vector<16x32xf32> -> vector<16x32xf32>
    %c0_23 = arith.constant 0 : index
    %c0_24 = arith.constant 0 : index
    %22 = vector.load %arg11[%c0_23, %c0_24] : memref<1x32xf32, #tpu.memory_space<vmem>>, vector<1x32xf32>
    %23 = vector.broadcast %22 : vector<1x32xf32> to vector<16x32xf32>
    %24 = arith.addf %21, %23 : vector<16x32xf32>
    %25 = arith.truncf %6 : vector<16x32xf32> to vector<16x32xbf16>
    %c0_25 = arith.constant 0 : index
    %c0_26 = arith.constant 0 : index
    %26 = vector.load %arg12[%c0_25, %c0_26] : memref<16x32xbf16, #tpu.memory_space<vmem>>, vector<16x32xbf16>
    tpu.vector_store %arg12[%c0_25, %c0_26], %25 {strides = array<i32>} : memref<16x32xbf16, #tpu.memory_space<vmem>>, vector<16x32xbf16>,
    %27 = arith.truncf %14 : vector<16x32xf32> to vector<16x32xbf16>
    %c0_27 = arith.constant 0 : index
    %c0_28 = arith.constant 0 : index
    %28 = vector.load %arg13[%c0_27, %c0_28] : memref<16x32xbf16, #tpu.memory_space<vmem>>, vector<16x32xbf16>
    tpu.vector_store %arg13[%c0_27, %c0_28], %27 {strides = array<i32>} : memref<16x32xbf16, #tpu.memory_space<vmem>>, vector<16x32xbf16>,
    %29 = arith.truncf %19 : vector<16x32xf32> to vector<16x32xbf16>
    %c0_29 = arith.constant 0 : index
    %c0_30 = arith.constant 0 : index
    %30 = vector.load %arg14[%c0_29, %c0_30] : memref<16x32xbf16, #tpu.memory_space<vmem>>, vector<16x32xbf16>
    tpu.vector_store %arg14[%c0_29, %c0_30], %29 {strides = array<i32>} : memref<16x32xbf16, #tpu.memory_space<vmem>>, vector<16x32xbf16>,
    %31 = arith.truncf %24 : vector<16x32xf32> to vector<16x32xbf16>
    %c0_31 = arith.constant 0 : index
    %c0_32 = arith.constant 0 : index
    %32 = vector.load %arg15[%c0_31, %c0_32] : memref<16x32xbf16, #tpu.memory_space<vmem>>, vector<16x32xbf16>
    tpu.vector_store %arg15[%c0_31, %c0_32], %31 {strides = array<i32>} : memref<16x32xbf16, #tpu.memory_space<vmem>>, vector<16x32xbf16>,
    return
  }
  func.func @transform_0(%arg0: i32) -> (i32, i32) {
    %c0_i32 = arith.constant 0 : i32
    %c0_i32_0 = arith.constant 0 : i32
    return %arg0, %c0_i32 : i32, i32
  }
  func.func @transform_1(%arg0: i32) -> (i32, i32) {
    %c0_i32 = arith.constant 0 : i32
    %c0_i32_0 = arith.constant 0 : i32
    return %arg0, %c0_i32 : i32, i32
  }
  func.func @transform_2(%arg0: i32) -> (i32, i32) {
    %c0_i32 = arith.constant 0 : i32
    %c0_i32_0 = arith.constant 0 : i32
    %c0_i32_1 = arith.constant 0 : i32
    return %c0_i32, %c0_i32_0 : i32, i32
  }
  func.func @transform_3(%arg0: i32) -> (i32, i32) {
    %c0_i32 = arith.constant 0 : i32
    %c0_i32_0 = arith.constant 0 : i32
    %c0_i32_1 = arith.constant 0 : i32
    return %c0_i32, %c0_i32_0 : i32, i32
  }
  func.func @transform_4(%arg0: i32) -> (i32, i32) {
    %c0_i32 = arith.constant 0 : i32
    %c0_i32_0 = arith.constant 0 : i32
    %c0_i32_1 = arith.constant 0 : i32
    return %c0_i32, %c0_i32_0 : i32, i32
  }
  func.func @transform_5(%arg0: i32) -> (i32, i32) {
    %c0_i32 = arith.constant 0 : i32
    %c0_i32_0 = arith.constant 0 : i32
    %c0_i32_1 = arith.constant 0 : i32
    return %c0_i32, %c0_i32_0 : i32, i32
  }
  func.func @transform_6(%arg0: i32) -> (i32, i32) {
    %c0_i32 = arith.constant 0 : i32
    %c0_i32_0 = arith.constant 0 : i32
    %c0_i32_1 = arith.constant 0 : i32
    return %c0_i32, %c0_i32_0 : i32, i32
  }
  func.func @transform_7(%arg0: i32) -> (i32, i32) {
    %c0_i32 = arith.constant 0 : i32
    %c0_i32_0 = arith.constant 0 : i32
    %c0_i32_1 = arith.constant 0 : i32
    return %c0_i32, %c0_i32_0 : i32, i32
  }
  func.func @transform_8(%arg0: i32) -> (i32, i32) {
    %c0_i32 = arith.constant 0 : i32
    %c0_i32_0 = arith.constant 0 : i32
    %c0_i32_1 = arith.constant 0 : i32
    return %c0_i32, %c0_i32_0 : i32, i32
  }
  func.func @transform_9(%arg0: i32) -> (i32, i32) {
    %c0_i32 = arith.constant 0 : i32
    %c0_i32_0 = arith.constant 0 : i32
    %c0_i32_1 = arith.constant 0 : i32
    return %c0_i32, %c0_i32_0 : i32, i32
  }
  func.func @transform_10(%arg0: i32) -> (i32, i32) {
    %c0_i32 = arith.constant 0 : i32
    %c0_i32_0 = arith.constant 0 : i32
    %c0_i32_1 = arith.constant 0 : i32
    return %c0_i32, %c0_i32_0 : i32, i32
  }
  func.func @transform_11(%arg0: i32) -> (i32, i32) {
    %c0_i32 = arith.constant 0 : i32
    %c0_i32_0 = arith.constant 0 : i32
    return %arg0, %c0_i32 : i32, i32
  }
  func.func @transform_12(%arg0: i32) -> (i32, i32) {
    %c0_i32 = arith.constant 0 : i32
    %c0_i32_0 = arith.constant 0 : i32
    return %arg0, %c0_i32 : i32, i32
  }
  func.func @transform_13(%arg0: i32) -> (i32, i32) {
    %c0_i32 = arith.constant 0 : i32
    %c0_i32_0 = arith.constant 0 : i32
    return %arg0, %c0_i32 : i32, i32
  }
  func.func @transform_14(%arg0: i32) -> (i32, i32) {
    %c0_i32 = arith.constant 0 : i32
    %c0_i32_0 = arith.constant 0 : i32
    return %arg0, %c0_i32 : i32, i32
  }
}

</mosaic_0001>

<bundles_post_ra>
// kernel: tpu_custom_call.1
= control target key start
LH: loop header
LB: loop body
LE: loop exit
PB: predicated region body
PF: predicated region fallthrough
CT: control target
= control target key end

     0   :  { %20 = vsyncpa [#allocation3], 0  ;;  %s953_s0 = inlined_call_operand.vmem [shape: f32[16,4], index: 0, kind: input, shape index: {}]   ;;  %s954_s1 = inlined_call_operand.vmem [shape: f32[16,3], index: 1, kind: input, shape index: {}]   ;;  %s955_s2 = inlined_call_operand.vmem [shape: f32[3,32], index: 2, kind: input, shape index: {}]   ;;  %s956_s3 = inlined_call_operand.vmem [shape: f32[1,32], index: 3, kind: input, shape index: {}]   ;;  %s957_s4 = inlined_call_operand.vmem [shape: f32[4,32], index: 4, kind: input, shape index: {}]   ;;  %s958_s5 = inlined_call_operand.vmem [shape: f32[1,32], index: 5, kind: input, shape index: {}]   ;;  %s959_s6 = inlined_call_operand.vmem [shape: f32[32,32], index: 6, kind: input, shape index: {}]   ;;  %s960_s7 = inlined_call_operand.vmem [shape: f32[3,32], index: 7, kind: input, shape index: {}]   ;;  %s961_s8 = inlined_call_operand.vmem [shape: f32[1,32], index: 8, kind: input, shape index: {}]   ;;  %s962_s9 = inlined_call_operand.vmem [shape: f32[4,32], index: 9, kind: input, shape index: {}]   ;;  %s963_s10 = inlined_call_operand.vmem [shape: f32[1,32], index: 10, kind: input, shape index: {}]   ;;  %s964_s11 = inlined_call_operand.hbm [shape: bf16[16,32], index: 11, kind: output, shape index: {0}]   ;;  %s965_s12 = inlined_call_operand.hbm [shape: bf16[16,32], index: 12, kind: output, shape index: {1}]   ;;  %s966_s13 = inlined_call_operand.hbm [shape: bf16[16,32], index: 13, kind: output, shape index: {2}]   ;;  %s967_s14 = inlined_call_operand.hbm [shape: bf16[16,32], index: 14, kind: output, shape index: {3}]  }
   0x1   :  { %21 = vsyncpa [#allocation5], 0  ;;  %v49_v0 = vld [vmem:[%s955_s2] sm:$0x7]  ;;  %vm64_vm0 = vcmask 1042432   ;;  %vm57_vm1 = vcmask 23552  }
   0x2   :  { %v47_v1 = vld [vmem:[%s954_s1] sm:$0xff]  ;;  %v48_v2 = vld [vmem:[%s954_s1 + $0x8] sm:$0xff]  ;;  %653 = vmatprep.subr.msk.mxu0 %vm64_vm0, %v49_v0  ;;  %vm158_vm2 = vcmask 1043456   ;;  %vm151_vm3 = vcmask 31744   ;;  %v240_v6 = vld [vmem:[%s959_s6 + $0x18] sm:$0xff] }
   0x3   :  { %655 = vmatprep.mubr.msk.f32.mxu0 %vm57_vm1, %v47_v1  ;;  %v143_v3 = vld [vmem:[%s957_s4] sm:$0xf]  ;;  %v46_v5 = vld [vmem:[%s953_s0 + $0x8] sm:$0xff]  ;;  %654 = vmatpush3.msk.msra.mxu0 %vm64_vm0, %v49_v0 }
   0x4   :  { %v45_v4 = vld [vmem:[%s953_s0] sm:$0xff]  ;;  %658 = vmatprep.subr.msk.mxu1 %vm158_vm2, %v143_v3 }
   0x5   :  { %v325_v7 = vld [vmem:[%s960_s7] sm:$0x7] }
   0x6   :  { %22 = vsyncpa [#allocation8], 0  ;;  %656 = vmatmul.mubr.msk.f32.vlgmr.msra.gmra.mxu0 %vm57_vm1, %v48_v2  ;;  %659 = vmatpush3.msk.msra.mxu1 %vm158_vm2, %v143_v3  ;;  %v239_v8 = vld [vmem:[%s959_s6 + $0x10] sm:$0xff]  ;;  %v238_v9 = vld [vmem:[%s959_s6 + $0x8] sm:$0xff]  ;;  %vm505_vm4 = vcmask 257024   ;;  %vm241_vm5 = vcmask 261120  }
   0x7   :  { %660 = vmatprep.mubr.msk.f32.mxu1 %vm151_vm3, %v45_v4  ;;  %663 = vmatprep.subr.mxu0 %v240_v6  ;;  %v411_v10 = vld [vmem:[%s962_s9] sm:$0xf] }
   0x8   :  { %661 = vmatmul.mubr.msk.f32.vlgmr.msra.gmra.mxu1 %vm151_vm3, %v46_v5  ;;  %674 = vmatprep.subr.msk.mxu1 %vm64_vm0, %v325_v7  ;;  %v237_v11 = vld [vmem:[%s959_s6] sm:$0xff] }
   0x9   :  { %664 = vmatpush3.msra.mxu0 %v240_v6  ;;  %675 = vmatpush3.msk.msra.mxu1 %vm64_vm0, %v325_v7  ;;  %v601_v12 = vld [vmem:[%s956_s3] ss:$0 sm:$0xff] }
   0xa   :  { %676 = vmatprep.mubr.msk.f32.mxu1 %vm57_vm1, %v47_v1  ;;  %665 = vmatprep.subr.mxu0 %v239_v8  ;;  %v611_v20 = vld [vmem:[%s961_s8] ss:$0 sm:$0xff]  ;;  %s776_s8 = smov [#allocation2]  }
   0xb   :  { %666 = vmatpush3.msra.mxu0 %v239_v8  ;;  %679 = vmatprep.subr.msk.mxu1 %vm158_vm2, %v411_v10  ;;  %v615_v28 = vld [vmem:[%s963_s10] ss:$0 sm:$0xff]  ;;  %s543_s19 = sshll.u32 %s776_s8, 4  ;;  %s544_s19 = int_to_ptr.vmem [resolvable:$true] %s543_s19 }
   0xc   :  { %677 = vmatmul.mubr.msk.f32.vlgmr.msra.gmra.mxu1 %vm57_vm1, %v48_v2  ;;  %667 = vmatprep.subr.mxu0 %v238_v9  ;;  %s690_s20 = scalar_lea.vmem %s544_s19, 128  ;;  %p695_p1 = scmp.lt.s32.totalorder %s544_s19, %s544_s19 }
   0xd   :  { %681 = vmatprep.mubr.msk.f32.mxu1 %vm151_vm3, %v45_v4  ;;  %668 = vmatpush3.msra.mxu0 %v238_v9  ;;  %p691_p0 = scmp.ne.s32.totalorder %s544_s19, %s690_s20  ;;  %p696_p2 = scmp.lt.s32.totalorder %s690_s20, %s690_s20 }
   0xe   :  { %680 = vmatpush3.msk.msra.mxu1 %vm158_vm2, %v411_v10  ;;  %669 = vmatprep.subr.mxu0 %v237_v11 }
   0xf   :  { %670 = vmatpush3.msra.mxu0 %v237_v11  ;;  %p697_p3 = por %p696_p2, %p695_p1 }
  0x10   :  { %682 = vmatmul.mubr.msk.f32.vlgmr.msra.gmra.mxu1 %vm151_vm3, %v46_v5 }
  0x11   :  { %p698_p4 = pnand %p697_p3, %p691_p0 }
  0xc6   :  { %v657_v13 = vpop.f32.mrf.mxu0 }
  0xc7   :  { %v140_v14 = vadd.f32 %v657_v13, %v601_v12 }
  0xc8   :  { %v134_v15 = vpop.f32.mrf.mxu0  ;;  %v662_v16 = vpop.f32.mrf.mxu1 }
  0xc9   :  { %v628_v17 = vpack.c.bf16 %v140_v14, %v140_v14  ;;  %v135_v18 = vadd.f32 %v601_v12, %v134_v15 }
  0xca   :  { %v228_v19 = vpop.f32.mrf.mxu1 }
  0xcb   :  { %507 = vst.msk [vmem:[#allocation2 + $0x4] sm:$0xf] %vm505_vm4, %v628_v17  ;;  %v627_v21 = vpack.c.bf16 %v135_v18, %v135_v18  ;;  %671 = vmatprep.mubr.msk.f32.mxu0 %vm241_vm5, %v135_v18 }
  0xcc   :  { %672 = vmatmul.mubr.msk.f32.vlgmr.msra.gmra.mxu0 %vm241_vm5, %v140_v14  ;;  %v678_v22 = vpop.f32.mrf.mxu1 }
  0xcd   :  { %506 = vst.msk [vmem:[#allocation2] sm:$0xf] %vm505_vm4, %v627_v21  ;;  %v408_v23 = vadd.f32 %v678_v22, %v611_v20 }
  0xce   :  { %v402_v24 = vpop.f32.mrf.mxu1 }
  0xcf   :  { %v632_v25 = vpack.c.bf16 %v408_v23, %v408_v23  ;;  %v403_v26 = vadd.f32 %v611_v20, %v402_v24 }
  0xd0   :  { %v683_v29 = vpop.f32.mrf.mxu1 }
  0xd1   :  { %527 = vst.msk [vmem:[#allocation6 + $0x4] sm:$0xf] %vm505_vm4, %v632_v25  ;;  %v631_v27 = vpack.c.bf16 %v403_v26, %v403_v26  ;;  %v494_v30 = vadd.f32 %v683_v29, %v615_v28 }
  0xd2   :  { %v488_v31 = vpop.f32.mrf.mxu1 }
  0xd3   :  { %526 = vst.msk [vmem:[#allocation6] sm:$0xf] %vm505_vm4, %v631_v27  ;;  %v634_v32 = vpack.c.bf16 %v494_v30, %v494_v30  ;;  %v489_v33 = vadd.f32 %v615_v28, %v488_v31 }
  0xd5   :  { %537 = vst.msk [vmem:[#allocation7 + $0x4] sm:$0xf] %vm505_vm4, %v634_v32  ;;  %v633_v34 = vpack.c.bf16 %v489_v33, %v489_v33 }
  0xd7   :  { %536 = vst.msk [vmem:[#allocation7] sm:$0xf] %vm505_vm4, %v633_v34 }
  0xd8   :  { %701 = shalt.err (!%p698_p4)
}
  0xd9   :  { %s777_s10 = smov 64   ;;  %s778_s2 = smov 4  }
  0xda   :  { %549 = dma.vmem_to_hbm [thread:$0]  %s544_s19, 128, %s964_s11, [#allocation3], %s777_s10, %s777_s10, %s778_s2  }
  0xdb   :  { %s779_s23 = smov [#allocation7]  }
  0xdc   :  { %s579_s1 = sshll.u32 %s779_s23, 4  ;;  %s580_s1 = int_to_ptr.vmem [resolvable:$true] %s579_s1 }
  0xdd   :  { %s710_s24 = scalar_lea.vmem %s580_s1, 128  ;;  %p715_p6 = scmp.lt.s32.totalorder %s580_s1, %s580_s1 }
  0xde   :  { %p711_p5 = scmp.ne.s32.totalorder %s580_s1, %s710_s24  ;;  %p716_p7 = scmp.lt.s32.totalorder %s710_s24, %s710_s24 }
  0xe0   :  { %p717_p8 = por %p716_p7, %p715_p6 }
  0xe2   :  { %p718_p9 = pnand %p717_p8, %p711_p5 }
  0xe4   :  { %721 = shalt.err (!%p718_p9)
}
  0xe5   :  { %585 = dma.vmem_to_hbm [thread:$0]  %s580_s1, 128, %s967_s14, [#allocation8], %s777_s10, %s777_s10, %s778_s2  }
  0xe6   :  { %v605_v35 = vld [vmem:[%s958_s5] ss:$0 sm:$0xff]  ;;  %s780_s11 = smov [#allocation4]   ;;  %s781_s27 = smov [#allocation6]  }
  0xe7   :  { %v234_v36 = vadd.f32 %v662_v16, %v605_v35  ;;  %v229_v38 = vadd.f32 %v605_v35, %v228_v19  ;;  %s555_s26 = sshll.u32 %s780_s11, 4  ;;  %s567_s28 = sshll.u32 %s781_s27, 4  ;;  %s556_s26 = int_to_ptr.vmem [resolvable:$true] %s555_s26  ;;  %s568_s28 = int_to_ptr.vmem [resolvable:$true] %s567_s28 }
  0xe8   :  { %s730_s14 = scalar_lea.vmem %s556_s26, 128  ;;  %p735_p11 = scmp.lt.s32.totalorder %s556_s26, %s556_s26 }
  0xe9   :  { %p731_p10 = scmp.ne.s32.totalorder %s556_s26, %s730_s14  ;;  %p736_p12 = scmp.lt.s32.totalorder %s730_s14, %s730_s14 }
  0xeb   :  { %p737_p13 = por %p736_p12, %p735_p11 }
  0xed   :  { %p738_p0 = pnand %p737_p13, %p731_p10 }
 0x18c   :  { %v673_v37 = vpop.f32.mrf.mxu0 }
 0x18d   :  { %v324_v39 = vadd.f32 %v673_v37, %v234_v36 }
 0x18e   :  { %v314_v40 = vpop.f32.mrf.mxu0 }
 0x18f   :  { %v630_v41 = vpack.c.bf16 %v324_v39, %v324_v39  ;;  %v323_v42 = vadd.f32 %v314_v40, %v229_v38 }
 0x191   :  { %517 = vst.msk [vmem:[#allocation4 + $0x4] sm:$0xf] %vm505_vm4, %v630_v41  ;;  %v629_v43 = vpack.c.bf16 %v323_v42, %v323_v42 }
 0x193   :  { %516 = vst.msk [vmem:[#allocation4] sm:$0xf] %vm505_vm4, %v629_v43 }
 0x194   :  { %741 = shalt.err (!%p738_p0)
}
 0x195   :  { %561 = dma.vmem_to_hbm [thread:$0]  %s556_s26, 128, %s965_s12, [#allocation5], %s777_s10, %s777_s10, %s778_s2  }
 0x196   :  { %s750_s30 = scalar_lea.vmem %s568_s28, 128  ;;  %p755_p2 = scmp.lt.s32.totalorder %s568_s28, %s568_s28 }
 0x197   :  { %p751_p1 = scmp.ne.s32.totalorder %s568_s28, %s750_s30  ;;  %p756_p3 = scmp.lt.s32.totalorder %s750_s30, %s750_s30 }
 0x199   :  { %p757_p4 = por %p756_p3, %p755_p2 }
 0x19b   :  { %p758_p5 = pnand %p757_p4, %p751_p1 }
 0x19d   :  { %761 = shalt.err (!%p758_p5)
}
 0x19e   :  { %573 = dma.vmem_to_hbm [thread:$0]  %s568_s28, 128, %s966_s13, [#allocation5], %s777_s10, %s777_s10, %s778_s2  }
 0x19f   :  { %770 = dma.done.wait [#allocation3], 128  }
 0x1a0   :  { %771 = vsyncadd [#allocation3], 4294967168 }
 0x1a1   :  { %772 = dma.done.wait [#allocation5], 256  }
 0x1a2   :  { %773 = vsyncadd [#allocation5], 4294967040 }
 0x1a3   :  { %774 = dma.done.wait [#allocation8], 128  }
 0x1a4   :  { %775 = vsyncadd [#allocation8], 4294967168 }
 0x1a5   :  { %598 = vsyncpa [#allocation3], 1 }
 0x1a6   :  { %599 = vsyncpa [#allocation5], 1 }
 0x1a7   :  { %600 = vsyncpa [#allocation8], 1 }

</bundles_post_ra>
